<compile_context>
chip_gen: v6e
topology: v6e:2x2x1
jax: 0.10.0
libtpu: 0.0.40
codegen_flags: <defaults>
</compile_context>

<pallas_src>
import functools

import jax
import jax.numpy as jnp
from jax.experimental import pallas as pl
from jax.experimental.pallas import tpu as pltpu

WB = 1.0
WD = 1.0
SMOOTH = 1.0
LOG_CLAMP = -100.0        # torch BCELoss clamps log terms at -100

_LANE = 128               # lane width of one tile row
# 4096 rows * 128 lanes * 4 B = 2 MiB per f32 input tile; double-buffered
# (f32 pred + bf16 target) stays well inside the 16 MiB default scoped VMEM
# on v5e and the 32 MiB defaults on v6e/v7x.  (v6e could go to 8192; keep
# <= 8192 on v7x because physical VMEM is only 64 MiB there.)
_MAX_TILE_ROWS = 4096


def _bce_dice_kernel(p_ref, t_ref, out_ref,
                     bce_acc, inter_acc, card_acc,
                     *, rows_valid, tile_rows, ragged):
    """Grid = (B, K).  p_ref / t_ref are (tile_rows, 128) tiles of sample b."""
    k = pl.program_id(1)
    nk = pl.num_programs(1)

    p = p_ref[...].astype(jnp.float32)
    t = t_ref[...].astype(jnp.float32)

    # ---- per-sample accumulator init (no cross-b state => b axis parallel) --
    @pl.when(k == 0)
    def _init_sample():
        bce_acc[...] = jnp.zeros_like(bce_acc)
        inter_acc[...] = jnp.zeros_like(inter_acc)
        card_acc[...] = jnp.zeros_like(card_acc)

    # ---- elementwise work (VPU + EUP only; no per-tile XLU reductions) ------
    log_p = jnp.maximum(jnp.log(p), LOG_CLAMP)
    log_1mp = jnp.maximum(jnp.log(1.0 - p), LOG_CLAMP)
    # == -(t*log_p + (1-t)*log_1mp), reordered to save a VPU mul/sub.
    # TODO(synk): for guaranteed hard {0,1} masks a single log of
    # where(t>=0.5, p, 1-p) would halve EUP work, but breaks soft targets.
    bce_elem = -(log_1mp + t * (log_p - log_1mp))
    inter_elem = p * t
    card_elem = p + t

    if ragged:
        # Last tile of the row axis extends past the array; mask junk rows.
        row = (k * tile_rows
               + jax.lax.broadcasted_iota(jnp.int32, (tile_rows, 1), 0))
        valid = row < rows_valid
        bce_elem = jnp.where(valid, bce_elem, 0.0)
        inter_elem = jnp.where(valid, inter_elem, 0.0)
        card_elem = jnp.where(valid, card_elem, 0.0)

    # ---- fold each tile down to (8,128) with pure VPU vreg adds, then RMW
    #      only the small scratch (keeps the store slot free for streaming). --
    g = tile_rows // 8
    bce_acc[...] += bce_elem.reshape(g, 8, _LANE).sum(axis=0)
    inter_acc[...] += inter_elem.reshape(g, 8, _LANE).sum(axis=0)
    card_acc[...] += card_elem.reshape(g, 8, _LANE).sum(axis=0)

    # ---- per-sample finalize: one tiny (8,128) XLU reduce per quantity ------
    @pl.when(k == nk - 1)
    def _finish_sample():
        bce_sum = jnp.sum(bce_acc[...])
        inter = jnp.sum(inter_acc[...])
        card = jnp.sum(card_acc[...])
        lane = jax.lax.broadcasted_iota(jnp.int32, (8, _LANE), 1)
        sub = jax.lax.broadcasted_iota(jnp.int32, (8, _LANE), 0)
        out_ref[...] = jnp.where(
            sub == 0,
            jnp.where(lane == 0, bce_sum,
                      jnp.where(lane == 1, inter,
                                jnp.where(lane == 2, card, 0.0))),
            0.0)


def bce_dice_loss(pred, target):
    """pred: (B, C, H, W) probabilities in (0,1); target: same shape (any
    float/bool dtype; binary masks may be bf16/bool to halve their HBM bytes)."""
    B = pred.shape[0]
    N = int(pred.size) // B

    p2 = pred.reshape(B, N)
    t2 = target.reshape(B, N)                    # native dtype; kernel upcasts
    if p2.dtype != jnp.float32:
        p2 = p2.astype(jnp.float32)              # keep pred f32 for log(1-p)

    # Layout: per-sample rows of 128 lanes; row count rounded to a multiple
    # of 8 so each tile folds cleanly into the (8,128) accumulators.
    R = -(-N // _LANE)
    r8 = -(-R // 8) * 8
    n_pad = r8 * _LANE
    if n_pad != N:
        # Fallback only when C*H*W is not a multiple of 1024 (rare).  Zero
        # padding contributes exactly 0 to all sums (clamped logs), and the
        # BCE mean still divides by the true element count below.
        p2 = jnp.pad(p2, ((0, 0), (0, n_pad - N)))
        t2 = jnp.pad(t2, ((0, 0), (0, n_pad - N)))
    R = r8
    p3 = p2.reshape(B, R, _LANE)
    t3 = t2.reshape(B, R, _LANE)

    tr = R if R <= _MAX_TILE_ROWS else _MAX_TILE_ROWS
    k_steps = -(-R // tr)
    ragged = (R % tr) != 0                       # masked in-kernel, no jnp.pad

    kernel = functools.partial(_bce_dice_kernel,
                               rows_valid=R, tile_rows=tr, ragged=ragged)
    tile_spec = pl.BlockSpec((None, tr, _LANE), lambda b, k: (b, k, 0))

    out = pl.pallas_call(
        kernel,
        out_shape=jax.ShapeDtypeStruct((B, 8, _LANE), jnp.float32),
        grid_spec=pltpu.PrefetchScalarGridSpec(
            num_scalar_prefetch=0,
            grid=(B, k_steps),
            in_specs=[tile_spec, tile_spec],
            out_specs=pl.BlockSpec((None, 8, _LANE), lambda b, k: (b, 0, 0)),
            scratch_shapes=[
                pltpu.VMEM((8, _LANE), jnp.float32),   # BCE partial sums
                pltpu.VMEM((8, _LANE), jnp.float32),   # intersection partials
                pltpu.VMEM((8, _LANE), jnp.float32),   # cardinality partials
            ],
        ),
        compiler_params=pltpu.CompilerParams(
            # b axis carries no state (scratch reset at k==0, per-b outputs),
            # so it can be split across TensorCores on v7x; k accumulates.
            dimension_semantics=("parallel", "arbitrary"),
        ),
        # TODO(synk): when B == 1 on v7x, split the row axis across the two
        # TensorCores instead (per-core partial outputs combined here).
    )(p3, t3)

    per_b = out[:, 0, :]
    bce = jnp.sum(per_b[:, 0]) / jnp.float32(B * N)
    dice_score = (2.0 * per_b[:, 1] + SMOOTH) / (per_b[:, 2] + SMOOTH)
    dice = 1.0 - jnp.sum(dice_score) / jnp.float32(B)
    return WD * dice + WB * bce


def _reference(pred, target):
    # Pure-JAX reference mirroring the PyTorch module.
    B = pred.shape[0]
    p = pred.reshape(B, -1).astype(jnp.float32)
    t = target.reshape(B, -1).astype(jnp.float32)
    log_p = jnp.maximum(jnp.log(p), LOG_CLAMP)
    log_1mp = jnp.maximum(jnp.log(1.0 - p), LOG_CLAMP)
    bce = jnp.mean(-(t * log_p + (1.0 - t) * log_1mp))
    inter = jnp.sum(p * t, axis=1)
    dice_score = (2.0 * inter + SMOOTH) / (jnp.sum(p, 1) + jnp.sum(t, 1) + SMOOTH)
    dice = 1.0 - jnp.sum(dice_score) / B
    return WD * dice + WB * bce


if __name__ == "__main__":
    key = jax.random.PRNGKey(0)
    k1, k2 = jax.random.split(key)

    B, C, H, W = 2, 4, 16, 16
    # pred are probabilities in (0, 1); target is a binary mask (bf16 is
    # exact for {0,1} and streams fewer HBM bytes).
    pred = jax.nn.sigmoid(jax.random.normal(k1, (B, C, H, W), dtype=jnp.float32))
    target = (jax.random.uniform(k2, (B, C, H, W)) > 0.5).astype(jnp.bfloat16)

    loss = jax.block_until_ready(bce_dice_loss(pred, target))
    ref = _reference(pred, target)
    assert jnp.allclose(loss, ref, rtol=1e-5, atol=1e-5), (loss, ref)
    print("KERNEL_OK")
</pallas_src>

<mosaic_0001>
module attributes {stable_mosaic.version = 11 : i64} {
  func.func @_bce_dice_kernel(%arg0: i32, %arg1: i32, %arg2: memref<1x8x128xf32, #tpu.memory_space<vmem>>, %arg3: memref<1x8x128xbf16, #tpu.memory_space<vmem>>, %arg4: memref<1x8x128xf32, #tpu.memory_space<vmem>>, %arg5: memref<8x128xf32, #tpu.memory_space<vmem>>, %arg6: memref<8x128xf32, #tpu.memory_space<vmem>>, %arg7: memref<8x128xf32, #tpu.memory_space<vmem>>) attributes {dimension_semantics = [#tpu.dimension_semantics<parallel>, #tpu.dimension_semantics<arbitrary>], iteration_bounds = array<i64: 2, 1>, scalar_prefetch = 0 : i64, scratch_operands = 3 : i64, tpu.core_type = #tpu.core_type<tc>, window_params = [{transform_indices = @transform_0, window_bounds = array<i64: 1, 8, 128>}, {transform_indices = @transform_1, window_bounds = array<i64: 1, 8, 128>}, {transform_indices = @transform_2, window_bounds = array<i64: 1, 8, 128>}]} {
    %c0 = arith.constant 0 : index
    %c0_0 = arith.constant 0 : index
    %c0_1 = arith.constant 0 : index
    %0 = vector.load %arg2[%c0, %c0_0, %c0_1] : memref<1x8x128xf32, #tpu.memory_space<vmem>>, vector<1x8x128xf32>
    %1 = vector.shape_cast %0 : vector<1x8x128xf32> to vector<8x128xf32>
    %c0_2 = arith.constant 0 : index
    %c0_3 = arith.constant 0 : index
    %c0_4 = arith.constant 0 : index
    %2 = vector.load %arg3[%c0_2, %c0_3, %c0_4] : memref<1x8x128xbf16, #tpu.memory_space<vmem>>, vector<1x8x128xbf16>
    %3 = vector.shape_cast %2 : vector<1x8x128xbf16> to vector<8x128xbf16>
    %4 = arith.extf %3 : vector<8x128xbf16> to vector<8x128xf32>
    %c0_i32 = arith.constant 0 : i32
    %5 = arith.cmpi eq, %arg1, %c0_i32 : i32
    %6 = arith.extui %5 : i1 to i32
    %c0_i32_5 = arith.constant 0 : i32
    %7 = arith.cmpi ne, %6, %c0_i32_5 : i32
    scf.if %7 {
      %cst_26 = arith.constant 0.000000e+00 : f32
      %41 = vector.broadcast %cst_26 : f32 to vector<8x128xf32>
      %c0_27 = arith.constant 0 : index
      %c0_28 = arith.constant 0 : index
      %42 = vector.load %arg5[%c0_27, %c0_28] : memref<8x128xf32, #tpu.memory_space<vmem>>, vector<8x128xf32>
      tpu.vector_store %arg5[%c0_27, %c0_28], %41 {strides = array<i32>} : memref<8x128xf32, #tpu.memory_space<vmem>>, vector<8x128xf32>,
      %cst_29 = arith.constant 0.000000e+00 : f32
      %43 = vector.broadcast %cst_29 : f32 to vector<8x128xf32>
      %c0_30 = arith.constant 0 : index
      %c0_31 = arith.constant 0 : index
      %44 = vector.load %arg6[%c0_30, %c0_31] : memref<8x128xf32, #tpu.memory_space<vmem>>, vector<8x128xf32>
      tpu.vector_store %arg6[%c0_30, %c0_31], %43 {strides = array<i32>} : memref<8x128xf32, #tpu.memory_space<vmem>>, vector<8x128xf32>,
      %cst_32 = arith.constant 0.000000e+00 : f32
      %45 = vector.broadcast %cst_32 : f32 to vector<8x128xf32>
      %c0_33 = arith.constant 0 : index
      %c0_34 = arith.constant 0 : index
      %46 = vector.load %arg7[%c0_33, %c0_34] : memref<8x128xf32, #tpu.memory_space<vmem>>, vector<8x128xf32>
      tpu.vector_store %arg7[%c0_33, %c0_34], %45 {strides = array<i32>} : memref<8x128xf32, #tpu.memory_space<vmem>>, vector<8x128xf32>,
    } else {
    }
    %8 = math.log %1 : vector<8x128xf32>
    %cst = arith.constant -1.000000e+02 : f32
    %9 = vector.broadcast %cst : f32 to vector<8x128xf32>
    %10 = arith.maximumf %8, %9 : vector<8x128xf32>
    %cst_6 = arith.constant 1.000000e+00 : f32
    %11 = vector.broadcast %cst_6 : f32 to vector<8x128xf32>
    %12 = arith.subf %11, %1 : vector<8x128xf32>
    %13 = math.log %12 : vector<8x128xf32>
    %cst_7 = arith.constant -1.000000e+02 : f32
    %14 = vector.broadcast %cst_7 : f32 to vector<8x128xf32>
    %15 = arith.maximumf %13, %14 : vector<8x128xf32>
    %16 = arith.subf %10, %15 : vector<8x128xf32>
    %17 = arith.mulf %4, %16 : vector<8x128xf32>
    %18 = arith.addf %15, %17 : vector<8x128xf32>
    %cst_8 = arith.constant 0.000000e+00 : f32
    %19 = vector.broadcast %cst_8 : f32 to vector<8x128xf32>
    %20 = arith.subf %19, %18 : vector<8x128xf32>
    %21 = arith.mulf %1, %4 : vector<8x128xf32>
    %22 = arith.addf %1, %4 : vector<8x128xf32>
    %c0_9 = arith.constant 0 : index
    %c0_10 = arith.constant 0 : index
    %23 = vector.load %arg5[%c0_9, %c0_10] : memref<8x128xf32, #tpu.memory_space<vmem>>, vector<8x128xf32>
    %24 = vector.shape_cast %20 : vector<8x128xf32> to vector<1x8x128xf32>
    %cst_11 = arith.constant dense<0.000000e+00> : vector<8x128xf32>
    %25 = vector.multi_reduction <add>, %24, %cst_11 [0] : vector<1x8x128xf32> to vector<8x128xf32>
    %26 = arith.addf %23, %25 : vector<8x128xf32>
    %c0_12 = arith.constant 0 : index
    %c0_13 = arith.constant 0 : index
    %27 = vector.load %arg5[%c0_12, %c0_13] : memref<8x128xf32, #tpu.memory_space<vmem>>, vector<8x128xf32>
    tpu.vector_store %arg5[%c0_12, %c0_13], %26 {strides = array<i32>} : memref<8x128xf32, #tpu.memory_space<vmem>>, vector<8x128xf32>,
    %c0_14 = arith.constant 0 : index
    %c0_15 = arith.constant 0 : index
    %28 = vector.load %arg6[%c0_14, %c0_15] : memref<8x128xf32, #tpu.memory_space<vmem>>, vector<8x128xf32>
    %29 = vector.shape_cast %21 : vector<8x128xf32> to vector<1x8x128xf32>
    %cst_16 = arith.constant dense<0.000000e+00> : vector<8x128xf32>
    %30 = vector.multi_reduction <add>, %29, %cst_16 [0] : vector<1x8x128xf32> to vector<8x128xf32>
    %31 = arith.addf %28, %30 : vector<8x128xf32>
    %c0_17 = arith.constant 0 : index
    %c0_18 = arith.constant 0 : index
    %32 = vector.load %arg6[%c0_17, %c0_18] : memref<8x128xf32, #tpu.memory_space<vmem>>, vector<8x128xf32>
    tpu.vector_store %arg6[%c0_17, %c0_18], %31 {strides = array<i32>} : memref<8x128xf32, #tpu.memory_space<vmem>>, vector<8x128xf32>,
    %c0_19 = arith.constant 0 : index
    %c0_20 = arith.constant 0 : index
    %33 = vector.load %arg7[%c0_19, %c0_20] : memref<8x128xf32, #tpu.memory_space<vmem>>, vector<8x128xf32>
    %34 = vector.shape_cast %22 : vector<8x128xf32> to vector<1x8x128xf32>
    %cst_21 = arith.constant dense<0.000000e+00> : vector<8x128xf32>
    %35 = vector.multi_reduction <add>, %34, %cst_21 [0] : vector<1x8x128xf32> to vector<8x128xf32>
    %36 = arith.addf %33, %35 : vector<8x128xf32>
    %c0_22 = arith.constant 0 : index
    %c0_23 = arith.constant 0 : index
    %37 = vector.load %arg7[%c0_22, %c0_23] : memref<8x128xf32, #tpu.memory_space<vmem>>, vector<8x128xf32>
    tpu.vector_store %arg7[%c0_22, %c0_23], %36 {strides = array<i32>} : memref<8x128xf32, #tpu.memory_space<vmem>>, vector<8x128xf32>,
    %c0_i32_24 = arith.constant 0 : i32
    %38 = arith.cmpi eq, %arg1, %c0_i32_24 : i32
    %39 = arith.extui %38 : i1 to i32
    %c0_i32_25 = arith.constant 0 : i32
    %40 = arith.cmpi ne, %39, %c0_i32_25 : i32
    scf.if %40 {
      %c0_26 = arith.constant 0 : index
      %c0_27 = arith.constant 0 : index
      %41 = vector.load %arg5[%c0_26, %c0_27] : memref<8x128xf32, #tpu.memory_space<vmem>>, vector<8x128xf32>
      %42 = vector.shape_cast %41 : vector<8x128xf32> to vector<1x8x128xf32>
      %cst_28 = arith.constant dense<0.000000e+00> : vector<1xf32>
      %43 = vector.multi_reduction <add>, %42, %cst_28 [1, 2] : vector<1x8x128xf32> to vector<1xf32>
      %44 = vector.shape_cast %43 : vector<1xf32> to vector<1x1x1xf32>
      %45 = vector.extract %44[0, 0, 0] : f32 from vector<1x1x1xf32>
      %c0_29 = arith.constant 0 : index
      %c0_30 = arith.constant 0 : index
      %46 = vector.load %arg6[%c0_29, %c0_30] : memref<8x128xf32, #tpu.memory_space<vmem>>, vector<8x128xf32>
      %47 = vector.shape_cast %46 : vector<8x128xf32> to vector<1x8x128xf32>
      %cst_31 = arith.constant dense<0.000000e+00> : vector<1xf32>
      %48 = vector.multi_reduction <add>, %47, %cst_31 [1, 2] : vector<1x8x128xf32> to vector<1xf32>
      %49 = vector.shape_cast %48 : vector<1xf32> to vector<1x1x1xf32>
      %50 = vector.extract %49[0, 0, 0] : f32 from vector<1x1x1xf32>
      %c0_32 = arith.constant 0 : index
      %c0_33 = arith.constant 0 : index
      %51 = vector.load %arg7[%c0_32, %c0_33] : memref<8x128xf32, #tpu.memory_space<vmem>>, vector<8x128xf32>
      %52 = vector.shape_cast %51 : vector<8x128xf32> to vector<1x8x128xf32>
      %cst_34 = arith.constant dense<0.000000e+00> : vector<1xf32>
      %53 = vector.multi_reduction <add>, %52, %cst_34 [1, 2] : vector<1x8x128xf32> to vector<1xf32>
      %54 = vector.shape_cast %53 : vector<1xf32> to vector<1x1x1xf32>
      %55 = vector.extract %54[0, 0, 0] : f32 from vector<1x1x1xf32>
      %56 = tpu.iota {dimensions = array<i32: 1>} : vector<8x128xi32>
      %57 = tpu.iota {dimensions = array<i32: 0>} : vector<8x128xi32>
      %c0_i32_35 = arith.constant 0 : i32
      %58 = vector.broadcast %c0_i32_35 : i32 to vector<8x128xi32>
      %59 = arith.cmpi eq, %57, %58 : vector<8x128xi32>
      %c0_i32_36 = arith.constant 0 : i32
      %60 = vector.broadcast %c0_i32_36 : i32 to vector<8x128xi32>
      %61 = arith.cmpi eq, %56, %60 : vector<8x128xi32>
      %c1_i32 = arith.constant 1 : i32
      %62 = vector.broadcast %c1_i32 : i32 to vector<8x128xi32>
      %63 = arith.cmpi eq, %56, %62 : vector<8x128xi32>
      %c2_i32 = arith.constant 2 : i32
      %64 = vector.broadcast %c2_i32 : i32 to vector<8x128xi32>
      %65 = arith.cmpi eq, %56, %64 : vector<8x128xi32>
      %cst_37 = arith.constant 0.000000e+00 : f32
      %66 = vector.broadcast %55 : f32 to vector<8x128xf32>
      %67 = vector.broadcast %cst_37 : f32 to vector<8x128xf32>
      %68 = arith.select %65, %66, %67 : vector<8x128xi1>, vector<8x128xf32>
      %69 = vector.broadcast %50 : f32 to vector<8x128xf32>
      %70 = arith.select %63, %69, %68 : vector<8x128xi1>, vector<8x128xf32>
      %71 = vector.broadcast %45 : f32 to vector<8x128xf32>
      %72 = arith.select %61, %71, %70 : vector<8x128xi1>, vector<8x128xf32>
      %cst_38 = arith.constant 0.000000e+00 : f32
      %73 = vector.broadcast %cst_38 : f32 to vector<8x128xf32>
      %74 = arith.select %59, %72, %73 : vector<8x128xi1>, vector<8x128xf32>
      %c0_39 = arith.constant 0 : index
      %c0_40 = arith.constant 0 : index
      %c0_41 = arith.constant 0 : index
      %75 = vector.load %arg4[%c0_39, %c0_40, %c0_41] : memref<1x8x128xf32, #tpu.memory_space<vmem>>, vector<1x8x128xf32>
      %76 = vector.shape_cast %75 : vector<1x8x128xf32> to vector<8x128xf32>
      %77 = vector.shape_cast %74 : vector<8x128xf32> to vector<1x8x128xf32>
      tpu.vector_store %arg4[%c0_39, %c0_40, %c0_41], %77 {strides = array<i32>} : memref<1x8x128xf32, #tpu.memory_space<vmem>>, vector<1x8x128xf32>,
    } else {
    }
    return
  }
  func.func @transform_0(%arg0: i32, %arg1: i32) -> (i32, i32, i32) {
    %c0_i32 = arith.constant 0 : i32
    %c0_i32_0 = arith.constant 0 : i32
    return %arg0, %arg1, %c0_i32 : i32, i32, i32
  }
  func.func @transform_1(%arg0: i32, %arg1: i32) -> (i32, i32, i32) {
    %c0_i32 = arith.constant 0 : i32
    %c0_i32_0 = arith.constant 0 : i32
    return %arg0, %arg1, %c0_i32 : i32, i32, i32
  }
  func.func @transform_2(%arg0: i32, %arg1: i32) -> (i32, i32, i32) {
    %c0_i32 = arith.constant 0 : i32
    %c0_i32_0 = arith.constant 0 : i32
    %c0_i32_1 = arith.constant 0 : i32
    return %arg0, %c0_i32, %c0_i32_0 : i32, i32, i32
  }
}

</mosaic_0001>

<bundles_post_ra>
// kernel: tpu_custom_call.1
= control target key start
LH: loop header
LB: loop body
LE: loop exit
PB: predicated region body
PF: predicated region fallthrough
CT: control target
= control target key end

     0   :  { %7 = vsyncpa [#allocation6], 0  ;;  %s842_s0 = inlined_call_operand.hbm [shape: f32[2,8,128], index: 0, kind: input, shape index: {}]   ;;  %s843_s1 = inlined_call_operand.hbm [shape: bf16[2,8,128], index: 1, kind: input, shape index: {}]   ;;  %s844_s2 = inlined_call_operand.hbm [shape: f32[2,8,128], index: 2, kind: output, shape index: {}]  }
   0x1   :  { %9 = vsyncpa [#allocation6 + $0x1], 0 }
   0x2   :  { %10 = vsyncpa [#allocation9], 0 }
   0x3   :  { %12 = vsyncpa [#allocation9 + $0x1], 0 }
   0x4   :  { %13 = vsyncpa [#allocation7], 0 }
   0x5   :  { %15 = vsyncpa [#allocation7 + $0x1], 0  ;;  %s668_s9 = smov 0   ;;  %s670_s10 = smov 0  }
   0x6   :  { %s672_s11 = smov 0   ;;  %s674_s12 = smov 0  }
   0x7   :  { %s676_s13 = smov 0   ;;  %s678_s14 = smov 0  }
   0x8 LB: > { %s415_s15 = sadd.s32 4294967295, %s648_s14   ;;  %s416_s16 = sadd.s32 4294967294, %s648_s14   ;;  %s648_s14 = sphi %s678_s14, %s21_s14   ;;  %s644_s13 = sphi %s676_s13, %s856_s13   ;;  %s640_s12 = sphi %s674_s12, %s855_s12   ;;  %s636_s11 = sphi %s672_s11, %s854_s11   ;;  %s632_s10 = sphi %s670_s10, %s853_s10   ;;  %s628_s9 = sphi %s668_s9, %s852_s9  }
   0x9   : > { %s33_s17 = sadd.s32 1, %s644_s13  ;;  %s42_s18 = sadd.s32 1, %s636_s11 }
   0xa   : > { %p35_p0 = scmp.ge.s32.totalorder %s33_s17, 2  ;;  %p49_p1 = scmp.ne.s32.totalorder %s636_s11, %s632_s10 }
   0xb   : > { %p50_p2 = scmp.eq.s32.totalorder %s648_s14, 0  ;;  %p55_p3 = scmp.ne.s32.totalorder %s632_s10, %s628_s9 }
   0xc   : > { %s858_s17 = smov (%p35_p0, %s33_s17), 0  ;;  %p56_p5 = scmp.eq.s32.totalorder %s415_s15, 0 }
   0xd   : > { %p709_p4 = por %p50_p2, %p49_p1  ;;  %s37_s20 = ssub.s32 %s644_s13, %s858_s17 }
   0xe   : > { %p107_p6 = scmp.eq.s32.totalorder %s415_s15, 1  ;;  %p40_p7 = scmp.eq.s32.totalorder %s37_s20, 0 }
   0xf   : > { %p715_p8 = por %p56_p5, %p55_p3  ;;  %p113_p10 = scmp.eq.s32.totalorder %s416_s16, 1 }
  0x10   : > { %p719_p9 = por %p107_p6, %p49_p1  ;;  %p454_p13 = scmp.lt.s32.totalorder %s648_s14, 2 }
  0x11   : > { %s724_s23 = scalar_select %p40_p7, %s636_s11, %s42_s18  }
  0x12   : > { %p726_p11 = por %p113_p10, %p55_p3  ;;  %s733_s25 = sand.u32 1, %s636_s11  }
  0x13   : > { %s419_s26 = sshll.u32 %s733_s25, 3  ;;  %s420_s27 = sshll.u32 %s644_s13, 7 }
  0x14   : > { %s143_s30 = scalar_lea.hbm %s842_s0, %s420_s27  ;;  %s137_s3 = scalar_lea.vmem [#allocation5], %s419_s26 }
  0x15   : > { %s145_s4 = sshll.u32 %s137_s3, 4  ;;  %p742_p0 = pnand %p454_p13, %p709_p4  ;;  %s146_s4 = int_to_ptr.vmem [resolvable:$true] %s145_s4 }
  0x16   : > { %p423_p1 = scmp.ge.s32.totalorder %s648_s14, 1  ;;  %p169_p2 = scmp.lt.s32.totalorder %s648_s14, 3 }
  0x17   : > { %s134_s6 = scalar_lea.sflag [#allocation6], %s733_s25  ;;  %p510_p3 = pneg %p742_p0 }
  0x18   : > { %s521_s7 = scalar_lea.vmem %s146_s4, 128  ;;  %s650_s8 = smov [#allocation5]  }
  0x19   : > { %p522_p5 = scmp.ne.s32.totalorder %s146_s4, %s521_s7  ;;  %s526_s15 = sshll.u32 %s650_s8, 4  ;;  %s527_s15 = int_to_ptr.vmem [resolvable:$false] %s526_s15 }
  0x1a   : > { %s528_s16 = scalar_lea.vmem %s527_s15, 256  ;;  %p529_p4 = scmp.lt.s32.totalorder %s146_s4, %s527_s15 }
  0x1b   : > { %p524_p6 = pnand %p522_p5, %p510_p3  ;;  %p530_p10 = scmp.lt.s32.totalorder %s528_s16, %s521_s7 }
  0x1d   : > { %p525_p7 = pneg %p524_p6  ;;  %p531_p13 = por %p530_p10, %p529_p4 }
  0x1f   : > { %p532_p12 = pnand %p531_p13, %p525_p7 }
  0x21   : > { %535 = shalt.err (!%p532_p12)
}
  0x22   : > { %446 = dma.hbm_to_vmem [thread:$0]  (!%p742_p0), %s143_s30, 128, %s146_s4, %s134_s6  }
  0x23   : > { %p760_p5 = pnand %p423_p1, %p169_p2  ;;  %s421_s19 = sshll.u32 %s733_s25, 2 }
  0x24   : > { %s422_s20 = sshll.u32 %s644_s13, 6  ;;  %s156_s29 = scalar_lea.vmem [#allocation8], %s421_s19 }
  0x25   : > { %s162_s28 = scalar_lea.hbm %s843_s1, %s422_s20  ;;  %s164_s3 = sshll.u32 %s156_s29, 4  ;;  %s165_s3 = int_to_ptr.vmem [resolvable:$true] %s164_s3 }
  0x26   : > { %s153_s7 = scalar_lea.sflag [#allocation9], %s733_s25  ;;  %s549_s8 = scalar_lea.vmem %s165_s3, 64 }
  0x27   : > { %p550_p12 = scmp.ne.s32.totalorder %s165_s3, %s549_s8  ;;  %s651_s30 = smov [#allocation8]  }
  0x28   : > { %s554_s4 = sshll.u32 %s651_s30, 4  ;;  %s555_s4 = int_to_ptr.vmem [resolvable:$false] %s554_s4 }
  0x29   : > { %p552_p6 = pnand %p550_p12, %p510_p3  ;;  %s556_s6 = scalar_lea.vmem %s555_s4, 128 }
  0x2a   : > { %p557_p1 = scmp.lt.s32.totalorder %s165_s3, %s555_s4  ;;  %p558_p2 = scmp.lt.s32.totalorder %s556_s6, %s549_s8 }
  0x2b   : > { %p553_p7 = pneg %p552_p6 }
  0x2c   : > { %p559_p4 = por %p558_p2, %p557_p1 }
  0x2e   : > { %p560_p10 = pnand %p559_p4, %p553_p7 }
  0x30   : > { %563 = shalt.err (!%p560_p10)
}
  0x31   : > { %449 = dma.hbm_to_vmem [thread:$0]  (!%p742_p0), %s162_s28, 64, %s165_s3, %s153_s7  }
  0x32   : > { %173 = sbr.rel (%p760_p5) target bundleno = 311 (0x137), region = 28  ;;  %s778_s25 = sand.u32 (!%p760_p5), 1, %s632_s10  }
  0x33   : > { %s424_s15 = sshll.u32 (!%p760_p5), %s778_s25, 3  ;;  %s176_s16 = scalar_lea.sflag (!%p760_p5), [#allocation6], %s778_s25 }
  0x34   : > { %s179_s19 = scalar_lea.vmem (!%p760_p5), [#allocation5], %s424_s15 }
  0x37   : > { %615 = dma.done.wait (%p715_p8), %s176_s16, 128  }
  0x38   : > { %617 = vsyncadd (%p715_p8), %s176_s16, 4294967168  ;;  %s425_s5 = sshll.u32 %s778_s25, 2  ;;  %s185_s18 = scalar_lea.sflag [#allocation9], %s778_s25 }
  0x39   : > { %s188_s20 = scalar_lea.vmem [#allocation8], %s425_s5 }
  0x3a   : > { %619 = dma.done.wait (%p715_p8), %s185_s18, 64  }
  0x3b   : > { %621 = vsyncadd (%p715_p8), %s185_s18, 4294967232  ;;  %v214_v0 = vld [vmem:[%s179_s19] sm:$0xff]  ;;  %v215_v1 = vld [vmem:[%s188_s20] sm:$0xf]  ;;  %v282_v37 = vlaneseq  ;;  %s428_s28 = sshll.u32 %s640_s12, 7  ;;  %s213_s29 = scalar_lea.vmem [#allocation10], %s424_s15 }
  0x3c   : > { %v216_v2 = vunpack.c.l.bf16 %v215_v1  ;;  %504 = vlog2.f32 %v214_v0  ;;  %v227_v3 = vsub.f32 1.0, %v214_v0  ;;  %s312_s3 = sshll.u32 %s213_s29, 4  ;;  %s800_s30 = scalar_lea.hbm %s844_s2, %s428_s28  ;;  %s313_s3 = int_to_ptr.vmem [resolvable:$true] %s312_s3 }
  0x3d   : > { %v283_v38 = vand.u32 127, %v282_v37  ;;  %v285_v39 = vshrl.u32 %v282_v37, 7  ;;  %s299_s4 = scalar_lea.sflag [#allocation7], %s778_s25  ;;  %s564_s6 = scalar_lea.vmem %s313_s3, 128 }
  0x3e   : > { %v236_v4 = vadd.f32 %v216_v2, %v214_v0  ;;  %506 = vlog2.f32 %v227_v3  ;;  %v235_v15 = vmul.f32 %v216_v2, %v214_v0  ;;  %p565_p8 = scmp.ne.s32.totalorder %s313_s3, %s564_s6  ;;  %s652_s12 = smov [#allocation10]  }
  0x3f   : > { %vm289_vm0 = vcmp.eq.s32.totalorder %v283_v38, 2  ;;  %vm288_vm1 = vcmp.eq.s32.totalorder %v283_v38, 1  ;;  %vm287_vm2 = vcmp.eq.s32.totalorder %v283_v38, 0  ;;  %vm286_vm3 = vcmp.eq.s32.totalorder %v285_v39, 0  ;;  %s568_s15 = sshll.u32 %s652_s12, 4  ;;  %s569_s15 = int_to_ptr.vmem [resolvable:$false] %s568_s15 }
  0x40   : > { %273 = vadd.xlane.f32.xlu1 %v236_v4  ;;  %p566_p0 = pnand %p565_p8, %p719_p9  ;;  %s570_s16 = scalar_lea.vmem %s569_s15, 256 }
  0x41   : > { %p571_p13 = scmp.lt.s32.totalorder %s313_s3, %s569_s15  ;;  %p572_p5 = scmp.lt.s32.totalorder %s570_s16, %s564_s6 }
  0x42   : > { %p567_p3 = pneg %p566_p0 }
  0x43   : > { %p573_p12 = por %p572_p5, %p571_p13 }
  0x45   : > { %p574_p6 = pnand %p573_p12, %p567_p3 }
  0x49   : > { %v505_v5 = vpop.eup %504 }
  0x4a   : > { %v225_v6 = vmul.f32 0.6931472, %v505_v5 }
  0x4b   : > { %v507_v7 = vpop.eup %506 }
  0x4c   : > { %v226_v8 = vmax.f32 %v225_v6, -100.0  ;;  %v229_v9 = vmul.f32 0.6931472, %v507_v7 }
  0x4e   : > { %v230_v10 = vmax.f32 %v229_v9, -100.0 }
  0x50   : > { %v231_v11 = vsub.f32 %v226_v8, %v230_v10 }
  0x52   : > { %v232_v12 = vmul.f32 %v231_v11, %v216_v2 }
  0x54   : > { %v233_v13 = vadd.f32 %v232_v12, %v230_v10 }
  0x56   : > { %v234_v14 = vsub.f32 0.0, %v233_v13 }
  0x58   : > { %253 = vadd.xlane.f32.xlu0 %v234_v14 }
  0x5c   : > { %263 = vadd.xlane.f32.xlu0 %v235_v15 }
  0xc9   : > { %v274_v16 = vpop.xlane.xlu1 %273 }
  0xca   : > { %v275_v17 = vrot.slane %v274_v16, 4 }
  0xcc   : > { %v276_v18 = vadd.f32 %v275_v17, %v274_v16 }
  0xce   : > { %v277_v22 = vrot.slane %v276_v18, 2 }
  0xd0   : > { %v278_v28 = vadd.f32 %v277_v22, %v276_v18 }
  0xd2   : > { %v279_v33 = vrot.slane %v278_v28, 1 }
  0xd4   : > { %v280_v36 = vadd.f32 %v279_v33, %v278_v28 }
  0xe1   : > { %v254_v19 = vpop.xlane.xlu0 %253 }
  0xe2   : > { %v255_v20 = vrot.slane %v254_v19, 4 }
  0xe4   : > { %v256_v21 = vadd.f32 %v255_v20, %v254_v19 }
  0xe5   : > { %v264_v23 = vpop.xlane.xlu0 %263 }
  0xe6   : > { %v257_v24 = vrot.slane %v256_v21, 2  ;;  %v265_v25 = vrot.slane %v264_v23, 4 }
  0xe8   : > { %v266_v26 = vadd.f32 %v265_v25, %v264_v23  ;;  %v258_v27 = vadd.f32 %v257_v24, %v256_v21 }
  0xea   : > { %v267_v29 = vrot.slane %v266_v26, 2  ;;  %v259_v30 = vrot.slane %v258_v27, 1 }
  0xec   : > { %v268_v31 = vadd.f32 %v267_v29, %v266_v26  ;;  %v260_v32 = vadd.f32 %v259_v30, %v258_v27 }
  0xee   : > { %431 = vpush %v260_v32  ;;  %v269_v34 = vrot.slane %v268_v31, 1 }
  0xf0   : > { %v270_v35 = vadd.f32 %v269_v34, %v268_v31 }
  0xf2   : > { %433 = vpush %v270_v35 }
  0xf3   : > { %435 = vpush %v280_v36 }
 0x11f   : > { %s432_s21 = spop %431 }
 0x120   : > { %v294_v43 = vstv %s432_s21 }
 0x123   : > { %s434_s26 = spop %433 }
 0x124   : > { %v292_v40 = vstv %s434_s26  ;;  %s436_s27 = spop %435 }
 0x125   : > { %v290_v41 = vstv %s436_s27 }
 0x126   : > { %v291_v42 = vsel %vm289_vm0, %v290_v41, 0.0 }
 0x127   : > { %v293_v44 = vsel %vm288_vm1, %v292_v40, %v291_v42 }
 0x128   : > { %v295_v45 = vsel %vm287_vm2, %v294_v43, %v293_v44 }
 0x129   : > { %v296_v46 = vsel %vm286_vm3, %v295_v45, 0.0 }
 0x12a   : > { %297 = vst [vmem:[%s213_s29] sm:$0xff] %v296_v46 }
 0x12b   : > { %577 = shalt.err (!%p574_p6)
}
 0x12c   : > { %s578_s19 = scalar_lea.hbm %s800_s30, 128  ;;  %s582_s18 = scalar_lea.hbm %s844_s2, 256 }
 0x12d   : > { %p579_p7 = scmp.ne.s32.totalorder %s800_s30, %s578_s19  ;;  %p583_p4 = scmp.lt.s32.totalorder %s800_s30, %s844_s2 }
 0x12e   : > { %p584_p10 = scmp.lt.s32.totalorder %s582_s18, %s578_s19 }
 0x12f   : > { %p580_p1 = pnand %p579_p7, %p719_p9 }
 0x130   : > { %p585_p8 = por %p584_p10, %p583_p4 }
 0x131   : > { %p581_p2 = pneg %p580_p1 }
 0x133   : > { %p586_p0 = pnand %p585_p8, %p581_p2 }
 0x135   : > { %589 = shalt.err (!%p586_p0)
}
 0x136   : > { %441 = dma.vmem_to_hbm [thread:$0]  (%p719_p9), %s313_s3, 128, %s800_s30, %s299_s4  }
 0x137 PF: > { %s324_s26 = sand.u32 1, %s628_s9   ;;  %p851_p3 = scmp.ge.s32.totalorder %s648_s14, 2 }
 0x138   : > { %s325_s27 = scalar_lea.sflag [#allocation7], %s324_s26 }
 0x139   : > { %p451_p13 = pnand %p851_p3, %p726_p11 }
 0x13b   : > { %p452_p5 = pneg %p451_p13 }
 0x13d   : > { %623 = dma.done.wait (%p452_p5), %s325_s27, 128  }
 0x13e   : > { %625 = vsyncadd (%p452_p5), %s325_s27, 4294967168  ;;  %s21_s14 = sadd.s32 1, %s648_s14   ;;  %s852_s9 = smov %s632_s10 }
 0x13f   : > { %p18_p12 = scmp.ge.s32.totalorder %s21_s14, 4   ;;  %s853_s10 = smov %s636_s11 }
 0x140   : > { %s854_s11 = smov %s724_s23  ;;  %s855_s12 = smov %s644_s13 }
 0x141   : > { %s856_s13 = smov %s858_s17  ;;  %20 = sbr.rel (!%p18_p12) target bundleno = 8 (0x8), region = 94 }
 0x146   :  { %330 = vsyncpa [#allocation6], 1 }
 0x147   :  { %332 = vsyncpa [#allocation6 + $0x1], 1 }
 0x148   :  { %333 = vsyncpa [#allocation9], 1 }
 0x149   :  { %335 = vsyncpa [#allocation9 + $0x1], 1 }
 0x14a   :  { %336 = vsyncpa [#allocation7], 1 }
 0x14b   :  { %338 = vsyncpa [#allocation7 + $0x1], 1 }

</bundles_post_ra>
